<compile_context>
chip_gen: v7x
topology: tpu7x:2x2x1
jax: 0.10.0
libtpu: 0.0.40
codegen_flags: <defaults>
</compile_context>

<pallas_src>
import functools

import jax
import jax.numpy as jnp
from jax.experimental import pallas as pl
from jax.experimental.pallas import tpu as pltpu


LANE = 128


def _round_up(n, m):
    return ((n + m - 1) // m) * m


def vae_kernel(
    xe_ref,        # (tb, xe_w)  : [x | eps | zero-pad]
    w_hid_ref,     # (xe_w + 2H + LP, H) : [w1_ext | w2 | wd1_pad | wd2]
    w_out_ref,     # (2H, 128)   : [w_mu||lv (lanes 0:2L) ; w_num||c1||c2 (lanes 2L:)]
    b_ref,         # (8, 128)    : rows b1,b2,bd1,bd2,b_out,0,0,0
    out_ref,       # (tb, 128)   : fused output slab
    *, input_dim, xe_w, hidden_dim, latent_dim, num_numerical, card1, card2,
):
    H = hidden_dim
    L = latent_dim
    LP = _round_up(max(L, 1), 8)
    o_w2 = xe_w
    o_d1 = xe_w + H
    o_d2 = xe_w + H + LP

    xe = xe_ref[...]

    # --- biases (rows of the packed bias slab) ---
    b1 = b_ref[0:1, :H]
    b2 = b_ref[1:2, :H]
    bd1 = b_ref[2:3, :H]
    bd2 = b_ref[3:4, :H]
    b_out = b_ref[4:5, :]        # carries BOTH head biases (added exactly once)

    # ---- encoder (w1 is zero-extended over the eps / pad lanes of xe) ----
    h = jnp.dot(xe, w_hid_ref[0:o_w2, :], preferred_element_type=jnp.float32) + b1
    h = jnp.maximum(h, 0.0)      # nn.Dropout -> identity at inference
    h = jnp.dot(h, w_hid_ref[o_w2:o_d1, :], preferred_element_type=jnp.float32) + b2
    h = jnp.maximum(h, 0.0)

    # ---- encoder head into lanes [0, 2L) of the fused slab ----
    slab = jnp.dot(h, w_out_ref[0:H, :], preferred_element_type=jnp.float32) + b_out

    mu = slab[:, :L]
    logvar = slab[:, L:2 * L]

    # ---- reparameterize (eps lives in lanes [input_dim, input_dim+L) of xe) ----
    eps = xe[:, input_dim:input_dim + L]
    z = mu + eps * jnp.exp(0.5 * logvar)

    # ---- decoder hidden ----
    if L <= 4:
        # K = latent_dim is tiny -> keep it off the MXU: VPU outer-product accumulation.
        wd1 = w_hid_ref[o_d1:o_d1 + LP, :]
        hd = bd1
        for l in range(L):                       # static, tiny trip count
            hd = hd + z[:, l:l + 1] * wd1[l:l + 1, :]
    else:
        hd = jnp.dot(z, w_hid_ref[o_d1:o_d1 + L, :],
                     preferred_element_type=jnp.float32) + bd1
    hd = jnp.maximum(hd, 0.0)
    hd = jnp.dot(hd, w_hid_ref[o_d2:o_d2 + H, :],
                 preferred_element_type=jnp.float32) + bd2
    hd = jnp.maximum(hd, 0.0)

    # ---- decoder heads into lanes [2L, 2L+num+c1+c2) of the SAME slab ----
    slab = slab + jnp.dot(hd, w_out_ref[H:2 * H, :],
                          preferred_element_type=jnp.float32)

    # ---- finalize: passthrough (mu|logvar|numerical) + single-pass 2-segment softmax ----
    lane = jax.lax.broadcasted_iota(jnp.int32, slab.shape, 1)
    n_end = 2 * L + num_numerical
    c1_hi = n_end + card1
    c2_hi = c1_hi + card2

    in_c1 = (lane >= n_end) & (lane < c1_hi)
    in_c2 = (lane >= c1_hi) & (lane < c2_hi)
    in_cat = in_c1 | in_c2

    m1 = jnp.max(jnp.where(in_c1, slab, -jnp.inf), axis=-1, keepdims=True)
    m2 = jnp.max(jnp.where(in_c2, slab, -jnp.inf), axis=-1, keepdims=True)
    m = jnp.where(lane < c1_hi, m1, m2)                      # per-lane segment max

    e = jnp.exp(jnp.where(in_cat, slab - m, -jnp.inf))       # exactly 0 outside cats
    s1 = jnp.sum(jnp.where(lane < c1_hi, e, 0.0), axis=-1, keepdims=True)
    s2 = jnp.sum(jnp.where(lane >= c1_hi, e, 0.0), axis=-1, keepdims=True)
    inv = jnp.where(lane < c1_hi,
                    pl.reciprocal(s1, approx=True),           # EUP slot
                    pl.reciprocal(s2, approx=True))

    out_ref[...] = jnp.where(lane < n_end, slab, 0.0) + e * inv


def vae_forward(x, eps, params, block_batch=None):
    """Runs the fused VAE forward kernel.

    Returns (numerical, cat1_probs, cat2_probs, mu, logvar).
    """
    B, input_dim = x.shape
    hidden_dim = params["w1"].shape[1]
    latent_dim = params["wmu"].shape[1]
    num_numerical = params["wnum"].shape[1]
    card1 = params["wc1"].shape[1]
    card2 = params["wc2"].shape[1]

    assert card1 > 0 and card2 > 0, "categorical cardinalities must be positive"
    assert hidden_dim % 8 == 0, "hidden_dim must be a multiple of 8"
    n_end = 2 * latent_dim + num_numerical
    total = n_end + card1 + card2
    assert total <= LANE, "fused output heads must fit in one 128-lane slab"

    xe_w = _round_up(input_dim + latent_dim, 8)
    LP = _round_up(latent_dim, 8)
    H = hidden_dim

    # ---- batch tiling (parallel grid axis, large default tile) ----
    if block_batch is None:
        block_batch = 1024
    b8 = _round_up(B, 8)
    tb = min(_round_up(block_batch, 8), b8)
    if b8 % tb != 0:
        # Prefer a slightly smaller tile that divides the batch over padding a
        # full copy of the inputs in the wrapper.
        for cand in range(tb - 8, max(tb // 2, 8) - 1, -8):
            if b8 % cand == 0:
                tb = cand
                break
    b_pad = pl.cdiv(b8, tb) * tb
    grid = (b_pad // tb,)

    # ---- pack the batch inputs: [x | eps | zero-pad] (one DMA stream) ----
    xe = jnp.concatenate([x, eps], axis=1)
    xe = jnp.pad(xe, ((0, b_pad - B), (0, xe_w - (input_dim + latent_dim))))

    # ---- packed hidden-dim weight slab: [w1_ext | w2 | wd1_pad | wd2] ----
    w1e = jnp.pad(params["w1"], ((0, xe_w - input_dim), (0, 0)))
    wd1p = jnp.pad(params["wd1"], ((0, LP - latent_dim), (0, 0)))
    w_hid = jnp.concatenate([w1e, params["w2"], wd1p, params["wd2"]], axis=0)

    # ---- packed 128-lane output-head weight slab ----
    w_mulv = jnp.concatenate([params["wmu"], params["wlv"]], axis=1)
    w_mulv = jnp.pad(w_mulv, ((0, 0), (0, LANE - 2 * latent_dim)))
    w_heads = jnp.concatenate([params["wnum"], params["wc1"], params["wc2"]], axis=1)
    w_heads = jnp.pad(w_heads, ((0, 0), (2 * latent_dim, LANE - total)))
    w_out = jnp.concatenate([w_mulv, w_heads], axis=0)          # (2H, 128)

    # ---- packed bias slab (8, 128) ----
    def pad_b(a):
        return jnp.pad(a, ((0, 0), (0, LANE - a.shape[1])))

    b_out = jnp.concatenate([params["bmu"], params["blv"], params["bnum"],
                             params["bc1"], params["bc2"]], axis=1)
    b_all = jnp.concatenate(
        [pad_b(params["b1"]), pad_b(params["b2"]), pad_b(params["bd1"]),
         pad_b(params["bd2"]), pad_b(b_out), jnp.zeros((3, LANE), jnp.float32)],
        axis=0)

    in_specs = [
        pl.BlockSpec((tb, xe_w), lambda i: (i, 0)),
        pl.BlockSpec(w_hid.shape, lambda i: (0, 0)),
        pl.BlockSpec(w_out.shape, lambda i: (0, 0)),
        pl.BlockSpec(b_all.shape, lambda i: (0, 0)),
    ]
    out_specs = pl.BlockSpec((tb, LANE), lambda i: (i, 0))
    out_shape = jax.ShapeDtypeStruct((b_pad, LANE), jnp.float32)

    # Only raise the scoped-VMEM limit when the double-buffered tile needs it
    # (v5e default scope is 16 MiB; v7x physical VMEM is 64 MiB).
    tile_bytes = 4 * (2 * tb * xe_w + 2 * tb * LANE
                      + int(w_hid.size) + int(w_out.size) + int(b_all.size))
    vmem_limit = None
    if tile_bytes > 12 * 1024 * 1024:
        vmem_limit = min(2 * tile_bytes, 96 * 1024 * 1024)

    flops = 2 * b_pad * (
        xe_w * H + H * H + H * LANE            # encoder + encoder head
        + latent_dim * H + H * H + H * LANE    # decoder + decoder heads
    )
    transcendentals = b_pad * (latent_dim + LANE + 2)
    bytes_accessed = 4 * (
        int(xe.size) + int(w_hid.size) + int(w_out.size) + int(b_all.size)
        + b_pad * LANE
    )

    kernel = functools.partial(
        vae_kernel,
        input_dim=input_dim,
        xe_w=xe_w,
        hidden_dim=hidden_dim,
        latent_dim=latent_dim,
        num_numerical=num_numerical,
        card1=card1,
        card2=card2,
    )

    out = pl.pallas_call(
        kernel,
        out_shape=out_shape,
        grid=grid,
        in_specs=in_specs,
        out_specs=out_specs,
        compiler_params=pltpu.CompilerParams(
            dimension_semantics=("parallel",),
            vmem_limit_bytes=vmem_limit,
        ),
        cost_estimate=pl.CostEstimate(
            flops=int(flops),
            transcendentals=int(transcendentals),
            bytes_accessed=int(bytes_accessed),
        ),
    )(xe, w_hid, w_out, b_all)

    # ---- slice the lane-dense slab back into the module's outputs ----
    mu = out[:B, :latent_dim]
    logvar = out[:B, latent_dim:2 * latent_dim]
    num = out[:B, 2 * latent_dim:n_end]
    c1 = out[:B, n_end:n_end + card1]
    c2 = out[:B, n_end + card1:n_end + card1 + card2]
    return num, c1, c2, mu, logvar


vae_forward_jit = jax.jit(vae_forward, static_argnames=("block_batch",))


def init_params(key, input_dim, num_numerical, hidden_dim, latent_dim, cardinalities):
    """Deterministic parameter init mimicking nn.Linear's U(-1/sqrt(fan_in), ...)."""
    def linear(k, fan_in, fan_out):
        kw, kb = jax.random.split(k)
        bound = 1.0 / jnp.sqrt(jnp.float32(fan_in))
        w = jax.random.uniform(kw, (fan_in, fan_out), jnp.float32, -bound, bound)
        b = jax.random.uniform(kb, (1, fan_out), jnp.float32, -bound, bound)
        return w, b

    keys = jax.random.split(key, 10)
    p = {}
    p["w1"], p["b1"] = linear(keys[0], input_dim, hidden_dim)
    p["w2"], p["b2"] = linear(keys[1], hidden_dim, hidden_dim)
    p["wmu"], p["bmu"] = linear(keys[2], hidden_dim, latent_dim)
    p["wlv"], p["blv"] = linear(keys[3], hidden_dim, latent_dim)
    p["wd1"], p["bd1"] = linear(keys[4], latent_dim, hidden_dim)
    p["wd2"], p["bd2"] = linear(keys[5], hidden_dim, hidden_dim)
    p["wnum"], p["bnum"] = linear(keys[6], hidden_dim, num_numerical)
    p["wc1"], p["bc1"] = linear(keys[7], hidden_dim, cardinalities[0])
    p["wc2"], p["bc2"] = linear(keys[8], hidden_dim, cardinalities[1])
    return p


def reference_forward(x, eps, params):
    """Plain-JAX reference for checking the kernel."""
    relu = lambda v: jnp.maximum(v, 0.0)
    h = relu(x @ params["w1"] + params["b1"])
    h = relu(h @ params["w2"] + params["b2"])
    mu = h @ params["wmu"] + params["bmu"]
    logvar = h @ params["wlv"] + params["blv"]
    z = mu + eps * jnp.exp(0.5 * logvar)
    hd = relu(z @ params["wd1"] + params["bd1"])
    hd = relu(hd @ params["wd2"] + params["bd2"])
    num = hd @ params["wnum"] + params["bnum"]
    c1 = jax.nn.softmax(hd @ params["wc1"] + params["bc1"], axis=-1)
    c2 = jax.nn.softmax(hd @ params["wc2"] + params["bc2"], axis=-1)
    return num, c1, c2, mu, logvar


if __name__ == "__main__":
    # Model config: 6 numerical features + 2 categorical features
    # (cardinalities 4 and 6, one-hot encoded) -> input_dim = 16.
    batch = 40                      # exercises a multi-step (grid > 1) launch
    num_numerical = 6
    cardinalities = (4, 6)
    input_dim = num_numerical + sum(cardinalities)
    hidden_dim = 32
    latent_dim = 2

    key = jax.random.PRNGKey(0)
    k_params, k_x, k_eps = jax.random.split(key, 3)

    params = init_params(
        k_params, input_dim, num_numerical, hidden_dim, latent_dim, cardinalities
    )
    x = jax.random.normal(k_x, (batch, input_dim), jnp.float32)
    eps = jax.random.normal(k_eps, (batch, latent_dim), jnp.float32)

    # block_batch=16 -> tile selection drops to tb=8 (divides 40) -> grid=(5,)
    # parallel batch tiles with no wrapper-side padding copy.
    outs = vae_forward_jit(x, eps, params, block_batch=16)
    outs = jax.block_until_ready(outs)

    refs = reference_forward(x, eps, params)
    for o, r in zip(outs, refs):
        assert o.shape == r.shape and o.dtype == r.dtype
        # 1e-3 tolerance: softmax denominators use the EUP approximate reciprocal.
        assert jnp.max(jnp.abs(o - r)) < 1e-3

    print("KERNEL_OK")
</pallas_src>

<mosaic_0001>
module attributes {stable_mosaic.version = 11 : i64} {
  func.func @vae_kernel(%arg0: i32, %arg1: memref<8x24xf32, #tpu.memory_space<vmem>>, %arg2: memref<96x32xf32, #tpu.memory_space<vmem>>, %arg3: memref<64x128xf32, #tpu.memory_space<vmem>>, %arg4: memref<8x128xf32, #tpu.memory_space<vmem>>, %arg5: memref<8x128xf32, #tpu.memory_space<vmem>>) attributes {dimension_semantics = [#tpu.dimension_semantics<parallel>], iteration_bounds = array<i64: 5>, scalar_prefetch = 0 : i64, scratch_operands = 0 : i64, tpu.core_type = #tpu.core_type<tc>, window_params = [{transform_indices = @transform_0, window_bounds = array<i64: 8, 24>}, {pipeline_mode = #tpu.pipeline_mode<synchronous>, transform_indices = @transform_1, window_bounds = array<i64: 96, 32>}, {pipeline_mode = #tpu.pipeline_mode<synchronous>, transform_indices = @transform_2, window_bounds = array<i64: 64, 128>}, {pipeline_mode = #tpu.pipeline_mode<synchronous>, transform_indices = @transform_3, window_bounds = array<i64: 8, 128>}, {transform_indices = @transform_4, window_bounds = array<i64: 8, 128>}]} {
    %c0 = arith.constant 0 : index
    %c0_0 = arith.constant 0 : index
    %0 = vector.load %arg1[%c0, %c0_0] : memref<8x24xf32, #tpu.memory_space<vmem>>, vector<8x24xf32>
    %c0_1 = arith.constant 0 : index
    %c0_2 = arith.constant 0 : index
    %1 = vector.load %arg4[%c0_1, %c0_2] : memref<8x128xf32, #tpu.memory_space<vmem>>, vector<1x32xf32>
    %c1 = arith.constant 1 : index
    %c0_3 = arith.constant 0 : index
    %2 = vector.load %arg4[%c1, %c0_3] : memref<8x128xf32, #tpu.memory_space<vmem>>, vector<1x32xf32>
    %c2 = arith.constant 2 : index
    %c0_4 = arith.constant 0 : index
    %3 = vector.load %arg4[%c2, %c0_4] : memref<8x128xf32, #tpu.memory_space<vmem>>, vector<1x32xf32>
    %c3 = arith.constant 3 : index
    %c0_5 = arith.constant 0 : index
    %4 = vector.load %arg4[%c3, %c0_5] : memref<8x128xf32, #tpu.memory_space<vmem>>, vector<1x32xf32>
    %c4 = arith.constant 4 : index
    %c0_6 = arith.constant 0 : index
    %5 = vector.load %arg4[%c4, %c0_6] : memref<8x128xf32, #tpu.memory_space<vmem>>, vector<1x128xf32>
    %c0_7 = arith.constant 0 : index
    %c0_8 = arith.constant 0 : index
    %6 = vector.load %arg2[%c0_7, %c0_8] : memref<96x32xf32, #tpu.memory_space<vmem>>, vector<24x32xf32>
    %cst = arith.constant dense<0.000000e+00> : vector<8x32xf32>
    %7 = tpu.matmul %0, %6, %cst {dimension_numbers = #tpu.dot_dimension_numbers<[1], [0], [0], [1], [0, 0, 1, 1], [], []>} : vector<8x24xf32>, vector<24x32xf32>, vector<8x32xf32> -> vector<8x32xf32>
    %8 = vector.broadcast %1 : vector<1x32xf32> to vector<8x32xf32>
    %9 = arith.addf %7, %8 : vector<8x32xf32>
    %cst_9 = arith.constant 0.000000e+00 : f32
    %10 = vector.broadcast %cst_9 : f32 to vector<8x32xf32>
    %11 = arith.maximumf %9, %10 : vector<8x32xf32>
    %c24 = arith.constant 24 : index
    %c0_10 = arith.constant 0 : index
    %12 = vector.load %arg2[%c24, %c0_10] : memref<96x32xf32, #tpu.memory_space<vmem>>, vector<32x32xf32>
    %cst_11 = arith.constant dense<0.000000e+00> : vector<8x32xf32>
    %13 = tpu.matmul %11, %12, %cst_11 {dimension_numbers = #tpu.dot_dimension_numbers<[1], [0], [0], [1], [0, 0, 1, 1], [], []>} : vector<8x32xf32>, vector<32x32xf32>, vector<8x32xf32> -> vector<8x32xf32>
    %14 = vector.broadcast %2 : vector<1x32xf32> to vector<8x32xf32>
    %15 = arith.addf %13, %14 : vector<8x32xf32>
    %cst_12 = arith.constant 0.000000e+00 : f32
    %16 = vector.broadcast %cst_12 : f32 to vector<8x32xf32>
    %17 = arith.maximumf %15, %16 : vector<8x32xf32>
    %c0_13 = arith.constant 0 : index
    %c0_14 = arith.constant 0 : index
    %18 = vector.load %arg3[%c0_13, %c0_14] : memref<64x128xf32, #tpu.memory_space<vmem>>, vector<32x128xf32>
    %cst_15 = arith.constant dense<0.000000e+00> : vector<8x128xf32>
    %19 = tpu.matmul %17, %18, %cst_15 {dimension_numbers = #tpu.dot_dimension_numbers<[1], [0], [0], [1], [0, 0, 1, 1], [], []>} : vector<8x32xf32>, vector<32x128xf32>, vector<8x128xf32> -> vector<8x128xf32>
    %20 = vector.broadcast %5 : vector<1x128xf32> to vector<8x128xf32>
    %21 = arith.addf %19, %20 : vector<8x128xf32>
    %22 = vector.extract_strided_slice %21 {offsets = [0, 0], sizes = [8, 2], strides = [1, 1]} : vector<8x128xf32> to vector<8x2xf32>
    %23 = vector.extract_strided_slice %21 {offsets = [0, 2], sizes = [8, 2], strides = [1, 1]} : vector<8x128xf32> to vector<8x2xf32>
    %24 = vector.extract_strided_slice %0 {offsets = [0, 16], sizes = [8, 2], strides = [1, 1]} : vector<8x24xf32> to vector<8x2xf32>
    %cst_16 = arith.constant 5.000000e-01 : f32
    %25 = vector.broadcast %cst_16 : f32 to vector<8x2xf32>
    %26 = arith.mulf %25, %23 : vector<8x2xf32>
    %27 = math.exp %26 : vector<8x2xf32>
    %28 = arith.mulf %24, %27 : vector<8x2xf32>
    %29 = arith.addf %22, %28 : vector<8x2xf32>
    %c56 = arith.constant 56 : index
    %c0_17 = arith.constant 0 : index
    %30 = vector.load %arg2[%c56, %c0_17] : memref<96x32xf32, #tpu.memory_space<vmem>>, vector<8x32xf32>
    %31 = vector.extract_strided_slice %29 {offsets = [0, 0], sizes = [8, 1], strides = [1, 1]} : vector<8x2xf32> to vector<8x1xf32>
    %32 = vector.extract_strided_slice %30 {offsets = [0, 0], sizes = [1, 32], strides = [1, 1]} : vector<8x32xf32> to vector<1x32xf32>
    %33 = vector.broadcast %31 : vector<8x1xf32> to vector<8x32xf32>
    %34 = vector.broadcast %32 : vector<1x32xf32> to vector<8x32xf32>
    %35 = arith.mulf %33, %34 : vector<8x32xf32>
    %36 = vector.broadcast %3 : vector<1x32xf32> to vector<8x32xf32>
    %37 = arith.addf %36, %35 : vector<8x32xf32>
    %38 = vector.extract_strided_slice %29 {offsets = [0, 1], sizes = [8, 1], strides = [1, 1]} : vector<8x2xf32> to vector<8x1xf32>
    %39 = vector.extract_strided_slice %30 {offsets = [1, 0], sizes = [1, 32], strides = [1, 1]} : vector<8x32xf32> to vector<1x32xf32>
    %40 = vector.broadcast %38 : vector<8x1xf32> to vector<8x32xf32>
    %41 = vector.broadcast %39 : vector<1x32xf32> to vector<8x32xf32>
    %42 = arith.mulf %40, %41 : vector<8x32xf32>
    %43 = arith.addf %37, %42 : vector<8x32xf32>
    %cst_18 = arith.constant 0.000000e+00 : f32
    %44 = vector.broadcast %cst_18 : f32 to vector<8x32xf32>
    %45 = arith.maximumf %43, %44 : vector<8x32xf32>
    %c64 = arith.constant 64 : index
    %c0_19 = arith.constant 0 : index
    %46 = vector.load %arg2[%c64, %c0_19] : memref<96x32xf32, #tpu.memory_space<vmem>>, vector<32x32xf32>
    %cst_20 = arith.constant dense<0.000000e+00> : vector<8x32xf32>
    %47 = tpu.matmul %45, %46, %cst_20 {dimension_numbers = #tpu.dot_dimension_numbers<[1], [0], [0], [1], [0, 0, 1, 1], [], []>} : vector<8x32xf32>, vector<32x32xf32>, vector<8x32xf32> -> vector<8x32xf32>
    %48 = vector.broadcast %4 : vector<1x32xf32> to vector<8x32xf32>
    %49 = arith.addf %47, %48 : vector<8x32xf32>
    %cst_21 = arith.constant 0.000000e+00 : f32
    %50 = vector.broadcast %cst_21 : f32 to vector<8x32xf32>
    %51 = arith.maximumf %49, %50 : vector<8x32xf32>
    %c32 = arith.constant 32 : index
    %c0_22 = arith.constant 0 : index
    %52 = vector.load %arg3[%c32, %c0_22] : memref<64x128xf32, #tpu.memory_space<vmem>>, vector<32x128xf32>
    %cst_23 = arith.constant dense<0.000000e+00> : vector<8x128xf32>
    %53 = tpu.matmul %51, %52, %cst_23 {dimension_numbers = #tpu.dot_dimension_numbers<[1], [0], [0], [1], [0, 0, 1, 1], [], []>} : vector<8x32xf32>, vector<32x128xf32>, vector<8x128xf32> -> vector<8x128xf32>
    %54 = arith.addf %21, %53 : vector<8x128xf32>
    %55 = tpu.iota {dimensions = array<i32: 1>} : vector<8x128xi32>
    %c10_i32 = arith.constant 10 : i32
    %56 = vector.broadcast %c10_i32 : i32 to vector<8x128xi32>
    %57 = arith.cmpi sge, %55, %56 : vector<8x128xi32>
    %c14_i32 = arith.constant 14 : i32
    %58 = vector.broadcast %c14_i32 : i32 to vector<8x128xi32>
    %59 = arith.cmpi slt, %55, %58 : vector<8x128xi32>
    %60 = arith.andi %57, %59 : vector<8x128xi1>
    %c14_i32_24 = arith.constant 14 : i32
    %61 = vector.broadcast %c14_i32_24 : i32 to vector<8x128xi32>
    %62 = arith.cmpi sge, %55, %61 : vector<8x128xi32>
    %c20_i32 = arith.constant 20 : i32
    %63 = vector.broadcast %c20_i32 : i32 to vector<8x128xi32>
    %64 = arith.cmpi slt, %55, %63 : vector<8x128xi32>
    %65 = arith.andi %62, %64 : vector<8x128xi1>
    %66 = arith.ori %60, %65 : vector<8x128xi1>
    %cst_25 = arith.constant 0xFF800000 : f32
    %67 = vector.broadcast %cst_25 : f32 to vector<8x128xf32>
    %68 = arith.select %60, %54, %67 : vector<8x128xi1>, vector<8x128xf32>
    %cst_26 = arith.constant dense<0xFF800000> : vector<8xf32>
    %69 = vector.multi_reduction <maximumf>, %68, %cst_26 [1] : vector<8x128xf32> to vector<8xf32>
    %70 = vector.shape_cast %69 : vector<8xf32> to vector<8x1xf32>
    %cst_27 = arith.constant 0xFF800000 : f32
    %71 = vector.broadcast %cst_27 : f32 to vector<8x128xf32>
    %72 = arith.select %65, %54, %71 : vector<8x128xi1>, vector<8x128xf32>
    %cst_28 = arith.constant dense<0xFF800000> : vector<8xf32>
    %73 = vector.multi_reduction <maximumf>, %72, %cst_28 [1] : vector<8x128xf32> to vector<8xf32>
    %74 = vector.shape_cast %73 : vector<8xf32> to vector<8x1xf32>
    %c14_i32_29 = arith.constant 14 : i32
    %75 = vector.broadcast %c14_i32_29 : i32 to vector<8x128xi32>
    %76 = arith.cmpi slt, %55, %75 : vector<8x128xi32>
    %77 = vector.shape_cast %70 : vector<8x1xf32> to vector<8x1xf32>
    %78 = vector.broadcast %77 : vector<8x1xf32> to vector<8x128xf32>
    %79 = vector.shape_cast %74 : vector<8x1xf32> to vector<8x1xf32>
    %80 = vector.broadcast %79 : vector<8x1xf32> to vector<8x128xf32>
    %81 = arith.select %76, %78, %80 : vector<8x128xi1>, vector<8x128xf32>
    %82 = arith.subf %54, %81 : vector<8x128xf32>
    %cst_30 = arith.constant 0xFF800000 : f32
    %83 = vector.broadcast %cst_30 : f32 to vector<8x128xf32>
    %84 = arith.select %66, %82, %83 : vector<8x128xi1>, vector<8x128xf32>
    %85 = math.exp %84 : vector<8x128xf32>
    %c14_i32_31 = arith.constant 14 : i32
    %86 = vector.broadcast %c14_i32_31 : i32 to vector<8x128xi32>
    %87 = arith.cmpi slt, %55, %86 : vector<8x128xi32>
    %cst_32 = arith.constant 0.000000e+00 : f32
    %88 = vector.broadcast %cst_32 : f32 to vector<8x128xf32>
    %89 = arith.select %87, %85, %88 : vector<8x128xi1>, vector<8x128xf32>
    %cst_33 = arith.constant dense<0.000000e+00> : vector<8xf32>
    %90 = vector.multi_reduction <add>, %89, %cst_33 [1] : vector<8x128xf32> to vector<8xf32>
    %91 = vector.shape_cast %90 : vector<8xf32> to vector<8x1xf32>
    %c14_i32_34 = arith.constant 14 : i32
    %92 = vector.broadcast %c14_i32_34 : i32 to vector<8x128xi32>
    %93 = arith.cmpi sge, %55, %92 : vector<8x128xi32>
    %cst_35 = arith.constant 0.000000e+00 : f32
    %94 = vector.broadcast %cst_35 : f32 to vector<8x128xf32>
    %95 = arith.select %93, %85, %94 : vector<8x128xi1>, vector<8x128xf32>
    %cst_36 = arith.constant dense<0.000000e+00> : vector<8xf32>
    %96 = vector.multi_reduction <add>, %95, %cst_36 [1] : vector<8x128xf32> to vector<8xf32>
    %97 = vector.shape_cast %96 : vector<8xf32> to vector<8x1xf32>
    %c14_i32_37 = arith.constant 14 : i32
    %98 = vector.broadcast %c14_i32_37 : i32 to vector<8x128xi32>
    %99 = arith.cmpi slt, %55, %98 : vector<8x128xi32>
    %100 = tpu.reciprocal %91 {approx = true} : vector<8x1xf32> -> vector<8x1xf32>
    %101 = tpu.reciprocal %97 {approx = true} : vector<8x1xf32> -> vector<8x1xf32>
    %102 = vector.shape_cast %100 : vector<8x1xf32> to vector<8x1xf32>
    %103 = vector.broadcast %102 : vector<8x1xf32> to vector<8x128xf32>
    %104 = vector.shape_cast %101 : vector<8x1xf32> to vector<8x1xf32>
    %105 = vector.broadcast %104 : vector<8x1xf32> to vector<8x128xf32>
    %106 = arith.select %99, %103, %105 : vector<8x128xi1>, vector<8x128xf32>
    %c10_i32_38 = arith.constant 10 : i32
    %107 = vector.broadcast %c10_i32_38 : i32 to vector<8x128xi32>
    %108 = arith.cmpi slt, %55, %107 : vector<8x128xi32>
    %cst_39 = arith.constant 0.000000e+00 : f32
    %109 = vector.broadcast %cst_39 : f32 to vector<8x128xf32>
    %110 = arith.select %108, %54, %109 : vector<8x128xi1>, vector<8x128xf32>
    %111 = arith.mulf %85, %106 : vector<8x128xf32>
    %112 = arith.addf %110, %111 : vector<8x128xf32>
    %c0_40 = arith.constant 0 : index
    %c0_41 = arith.constant 0 : index
    %113 = vector.load %arg5[%c0_40, %c0_41] : memref<8x128xf32, #tpu.memory_space<vmem>>, vector<8x128xf32>
    tpu.vector_store %arg5[%c0_40, %c0_41], %112 {strides = array<i32>} : memref<8x128xf32, #tpu.memory_space<vmem>>, vector<8x128xf32>,
    return
  }
  func.func @transform_0(%arg0: i32) -> (i32, i32) {
    %c0_i32 = arith.constant 0 : i32
    %c0_i32_0 = arith.constant 0 : i32
    return %arg0, %c0_i32 : i32, i32
  }
  func.func @transform_1(%arg0: i32) -> (i32, i32) {
    %c0_i32 = arith.constant 0 : i32
    %c0_i32_0 = arith.constant 0 : i32
    %c0_i32_1 = arith.constant 0 : i32
    return %c0_i32, %c0_i32_0 : i32, i32
  }
  func.func @transform_2(%arg0: i32) -> (i32, i32) {
    %c0_i32 = arith.constant 0 : i32
    %c0_i32_0 = arith.constant 0 : i32
    %c0_i32_1 = arith.constant 0 : i32
    return %c0_i32, %c0_i32_0 : i32, i32
  }
  func.func @transform_3(%arg0: i32) -> (i32, i32) {
    %c0_i32 = arith.constant 0 : i32
    %c0_i32_0 = arith.constant 0 : i32
    %c0_i32_1 = arith.constant 0 : i32
    return %c0_i32, %c0_i32_0 : i32, i32
  }
  func.func @transform_4(%arg0: i32) -> (i32, i32) {
    %c0_i32 = arith.constant 0 : i32
    %c0_i32_0 = arith.constant 0 : i32
    return %arg0, %c0_i32 : i32, i32
  }
}

</mosaic_0001>

<bundles_post_ra>
// kernel: vae_forward.1
= control target key start
LH: loop header
LB: loop body
LE: loop exit
PB: predicated region body
PF: predicated region fallthrough
CT: control target
= control target key end

     0   :  { %s921_s15 = smov 0   ;;  %s1049_s0 = inlined_call_operand.vmem [shape: f32[40,24], index: 0, kind: input, shape index: {}]   ;;  %s1050_s1 = inlined_call_operand.vmem [shape: f32[96,32], index: 1, kind: input, shape index: {}]   ;;  %s1051_s2 = inlined_call_operand.vmem [shape: f32[64,128], index: 2, kind: input, shape index: {}]   ;;  %s1052_s3 = inlined_call_operand.vmem [shape: f32[8,128], index: 3, kind: input, shape index: {}]   ;;  %s1053_s4 = inlined_call_operand.vmem [shape: f32[40,128], index: 4, kind: output, shape index: {}]  }
   0x1 LB: > { %s732_s16 = sadd.s32 4294967295, %s887_s15   ;;  %p736_p0 = scmp.ge.s32.totalorder %s887_s15, 1  ;;  %s887_s15 = sphi %s921_s15, %s14_s15  }
   0x2   : > { %p161_p1 = scmp.lt.s32.totalorder %s887_s15, 6 }
   0x4   : > { %p162_p2 = pnand %p736_p0, %p161_p1 }
   0x5   : > { %v199_v0 = vld [vmem:[%s1050_s1] sm:$0xff] (!%p162_p2)  ;;  %v200_v1 = vld [vmem:[%s1050_s1 + $0x8] sm:$0xff] (!%p162_p2)  ;;  %v889_v2 = vmov (!%p162_p2), 0.0|0.0   ;;  %vm890_vm0 = vmmov (!%p162_p2), 0   ;;  %v891_v4 = vmov (!%p162_p2), 0.0   ;;  %p185_p3 = scmp.lt.s32.totalorder (!%p162_p2), %s732_s16, 4  ;;  %v464_v51 = vlaneseq (!%p162_p2) }
   0x6   : > { %165 = sbr.rel (%p162_p2) target bundleno = 1805 (0x70d), region = 36  ;;  %828 = vmatprep.subr.bf16.mxu0 (!%p162_p2), %v889_v2  ;;  %v829_v3 = vpack.c.bf16 (!%p162_p2), %v200_v1, %v199_v0  ;;  %781 = vmatprep.mubr.msk.f32.mxu0 (!%p162_p2), %vm890_vm0, %v891_v4  ;;  %v281_v5 = vld [vmem:[%s1050_s1 + $0x18] sm:$0xff] (!%p162_p2)  ;;  %v282_v6 = vld [vmem:[%s1050_s1 + $0x20] sm:$0xff] (!%p162_p2)  ;;  %v201_v8 = vld [vmem:[%s1050_s1 + $0x10] sm:$0xff] (!%p162_p2)  ;;  %vm206_vm1 = vcmask (!%p162_p2), 195584   ;;  %vm289_vm2 = vcmask (!%p162_p2), 261120  }
   0x7   : > { %831 = vmatprep.subr.bf16.mxu1 (!%p162_p2), %v889_v2  ;;  %v832_v7 = vpack.c.bf16 (!%p162_p2), %v282_v6, %v281_v5  ;;  %792 = vmatprep.mubr.msk.f32.mxu1 (!%p162_p2), %vm890_vm0, %v891_v4  ;;  %v283_v10 = vld [vmem:[%s1050_s1 + $0x28] sm:$0xff] (!%p162_p2)  ;;  %v284_v11 = vld [vmem:[%s1050_s1 + $0x30] sm:$0xff] (!%p162_p2)  ;;  %v364_v13 = vld [vmem:[%s1051_s2] sm:$0xff] (!%p162_p2)  ;;  %s892_s25 = smov (!%p162_p2), 14   ;;  %v893_v36 = vmov (!%p162_p2), 0   ;;  %v894_v37 = vmov (!%p162_p2), 1  }
   0x8   : > { %830 = vmatpush3.bf16.msra.mxu0 (!%p162_p2), %v829_v3  ;;  %v835_v12 = vpack.c.bf16 (!%p162_p2), %v284_v11, %v283_v10  ;;  %v365_v14 = vld [vmem:[%s1051_s2 + $0x8] sm:$0xff] (!%p162_p2)  ;;  %v739_v16 = vld [vmem:[%s1052_s3] ss:$0 sm:$0xff] (!%p162_p2)  ;;  %v366_v21 = vld [vmem:[%s1051_s2 + $0x10] sm:$0xff] (!%p162_p2)  ;;  %870 = vset.pattern.permute.xlu1 (!%p162_p2), %v893_v36  ;;  %s895_s26 = smov (!%p162_p2), 112   ;;  %v465_v52 = vshrl.u32 (!%p162_p2), %v464_v51, 7 }
   0x9   : > { %779 = vmatprep.subr.mxu0 (!%p162_p2), %v891_v4  ;;  %833 = vmatpush3.bf16.msra.mxu1 (!%p162_p2), %v832_v7  ;;  %v838_v15 = vpack.c.bf16 (!%p162_p2), %v365_v14, %v364_v13  ;;  %v367_v22 = vld [vmem:[%s1051_s2 + $0x18] sm:$0xff] (!%p162_p2)  ;;  %v741_v24 = vld [vmem:[%s1052_s3 + $0x1] ss:$0 sm:$0xff] (!%p162_p2)  ;;  %v743_v29 = vld [vmem:[%s1052_s3 + $0x4] ss:$0 sm:$0xff] (!%p162_p2)  ;;  %v646_v10 = vand.u32 (!%p162_p2), 127, %v464_v51 }
   0xa   : > { %834 = vmatprep.subr.bf16.mxu1 (!%p162_p2), %v889_v2  ;;  %v841_v23 = vpack.c.bf16 (!%p162_p2), %v367_v22, %v366_v21  ;;  %872 = vset.pattern.permute.xlu0 (!%p162_p2), %v894_v37  ;;  %v485_v42 = vld [vmem:[%s1050_s1 + $0x40] sm:$0xff] (!%p162_p2)  ;;  %v486_v43 = vld [vmem:[%s1050_s1 + $0x48] sm:$0xff] (!%p162_p2)  ;;  %v487_v45 = vld [vmem:[%s1050_s1 + $0x50] sm:$0xff] (!%p162_p2)  ;;  %v466_v53 = vsub.s32 (!%p162_p2), 0, %v465_v52  ;;  %v480_v56 = vsub.s32 (!%p162_p2), 1, %v465_v52 }
   0xb   : > { %v844_v44 = vpack.c.bf16 (!%p162_p2), %v486_v43, %v485_v42  ;;  %v488_v46 = vld [vmem:[%s1050_s1 + $0x58] sm:$0xff] (!%p162_p2)  ;;  %v567_v48 = vld [vmem:[%s1051_s2 + $0x20] sm:$0xff] (!%p162_p2)  ;;  %v568_v49 = vld [vmem:[%s1051_s2 + $0x28] sm:$0xff] (!%p162_p2)  ;;  %vm650_vm3 = vcmp.ge.s32.totalorder (!%p162_p2), %v646_v10, 14  ;;  %vm651_vm4 = vcmp.lt.s32.totalorder (!%p162_p2), %v646_v10, 20  ;;  %vm647_vm5 = vcmp.ge.s32.totalorder (!%p162_p2), %v646_v10, 10 }
   0xc   : > { %780 = vmatpush3.msra.mxu0 (!%p162_p2), %v201_v8  ;;  %v847_v47 = vpack.c.bf16 (!%p162_p2), %v488_v46, %v487_v45  ;;  %v850_v50 = vpack.c.bf16 (!%p162_p2), %v568_v49, %v567_v48  ;;  %v458_v54 = vld [vmem:[%s1050_s1 + $0x38] sm:$0xff] (!%p162_p2)  ;;  %v745_v60 = vld [vmem:[%s1052_s3 + $0x2] ss:$0 sm:$0xff] (!%p162_p2)  ;;  %v746_v5 = vld [vmem:[%s1052_s3 + $0x3] ss:$0 sm:$0xff] (!%p162_p2)  ;;  %vm648_vm6 = vcmp.lt.s32.totalorder (!%p162_p2), %v646_v10, 14 }
   0xd   : > { %s1055_s16 = smov (!%p185_p3, %s732_s16), 4  ;;  %837 = vmatprep.subr.bf16.mxu0 %v889_v2  ;;  %836 = vmatpush3.bf16.msra.mxu1 %v835_v12  ;;  %v467_v55 = vrot.slane %v458_v54, %v466_v53  ;;  %v481_v59 = vrot.slane %v458_v54, %v480_v56  ;;  %v570_v3 = vld [vmem:[%s1051_s2 + $0x38] sm:$0xff]  ;;  %vm652_vm7 = vmand %vm650_vm3, %vm651_vm4  ;;  %vm674_vm10 = vcmp.lt.s32.totalorder %v646_v10, 10 }
   0xe   : > { %s737_s27 = sshll.u32 %s1055_s16, 3  ;;  %843 = vmatprep.subr.bf16.mxu1 %v889_v2  ;;  %vm649_vm8 = vmand %vm647_vm5, %vm648_vm6 }
   0xf   : > { %s188_s30 = scalar_lea.vmem %s1049_s0, %s737_s27  ;;  %vm653_vm9 = vmor %vm649_vm8, %vm652_vm7  ;;  %s192_s29 = scalar_lea.vmem %s1053_s4, %s737_s27 }
  0x10   : > { %v193_v9 = vld [vmem:[%s188_s30] sm:$0xff] }
  0x11   : > { %782 = vmatmul.mubr.msk.f32.vlgmr.msra.gmra.mrb[0].mxu0 %vm206_vm1, %v193_v9 }
  0x12   : > { %803 = vmatprep.mubr.msk.f32.mxu0 %vm890_vm0, %v891_v4  ;;  %839 = vmatpush3.bf16.msra.mxu0 %v838_v15 }
  0x13   : > { %840 = vmatprep.subr.bf16.mxu0 %v889_v2 }
  0x16   : > { %842 = vmatpush3.bf16.msra.mxu0 %v841_v23 }
  0x17   : > { %849 = vmatprep.subr.bf16.mxu0 %v889_v2 }
  0xe4   : > { %v276_v17 = vpop.f32.mrb[0].mxu0 }
  0xe5   : > { %v277_v18 = vadd.f32 %v739_v16, %v276_v17  ;;  %v783_v19 = vpop.f32.mrb[1].mxu0 }
  0xe7   : > { %v280_v20 = vmax.f32 %v277_v18, 0.0 }
  0xe9   : > { %793 = vmatmul.mubr.msk.f32.vlgmr.msra.gmra.mrb[0].mxu1 %vm289_vm2, %v280_v20 }
  0xea   : > { %814 = vmatprep.mubr.msk.f32.mxu1 %vm890_vm0, %v891_v4  ;;  %845 = vmatpush3.bf16.msra.mxu1 %v844_v44 }
  0xeb   : > { %846 = vmatprep.subr.bf16.mxu1 %v889_v2 }
  0xee   : > { %848 = vmatpush3.bf16.msra.mxu1 %v847_v47 }
 0x1bc   : > { %v359_v25 = vpop.f32.mrb[0].mxu1 }
 0x1bd   : > { %v360_v26 = vadd.f32 %v741_v24, %v359_v25  ;;  %v794_v27 = vpop.f32.mrb[1].mxu1 }
 0x1bf   : > { %v363_v28 = vmax.f32 %v360_v26, 0.0 }
 0x1c1   : > { %804 = vmatmul.mubr.msk.f32.vlgmr.msra.gmra.mrb[2].mxu0 %vm289_vm2, %v363_v28 }
 0x1c2   : > { %825 = vmatprep.mubr.msk.f32.mxu0 %vm890_vm0, %v891_v4  ;;  %851 = vmatpush3.bf16.msra.mxu0 %v850_v50 }
 0x1c3   : > { %852 = vmatprep.subr.bf16.mxu0 %v889_v2  ;;  %v569_v2 = vld [vmem:[%s1051_s2 + $0x30] sm:$0xff] }
 0x1c4   : > { %v853_v4 = vpack.c.bf16 %v570_v3, %v569_v2 }
 0x1c6   : > { %854 = vmatpush3.bf16.msra.mxu0 %v853_v4 }
 0x294   : > { %v441_v30 = vpop.f32.mrb[2].mxu0 }
 0x295   : > { %v993_v31 = vadd.f32 %v743_v29, %v441_v30  ;;  %v805_v32 = vpop.f32.mrb[3].mxu0 }
 0x297   : > { %v445_v33 = vmul.f32 0.5, %v993_v31 }
 0x299   : > { %v446_v34 = vmul.f32 1.442695, %v445_v33 }
 0x29b   : > { %873 = vpow2.f32 %v446_v34 }
 0x2a5   : > { %v874_v35 = vpop.eup %873 }
 0x2a6   : > { %449 = vrot.lane.b32.xlu0 %v874_v35, %s892_s25 }
 0x318   : > { %v450_v38 = vpop.permute.xlu0 %449 }
 0x319   : > { %v452_v39 = vmul.f32 %v450_v38, %v193_v9 }
 0x31b   : > { %454 = vrot.lane.b32.xlu0 %v452_v39, %s895_s26 }
 0x38d   : > { %v455_v40 = vpop.permute.xlu0 %454 }
 0x38e   : > { %v457_v41 = vadd.f32 %v455_v40, %v993_v31 }
 0x390   : > { %461 = vperm.xlu1 %870, %v457_v41  }
 0x394   : > { %871 = vset.pattern.permute.xlu1 %v894_v37 }
 0x395   : > { %475 = vperm.xlu1 %871, %v457_v41  }
 0x40f   : > { %v462_v57 = vpop.permute.xlu1 %461 }
 0x410   : > { %v468_v58 = vmul.f32 %v467_v55, %v462_v57 }
 0x412   : > { %v473_v62 = vadd.f32 %v745_v60, %v468_v58 }
 0x414   : > { %v476_v61 = vpop.permute.xlu1 %475 }
 0x415   : > { %v482_v63 = vmul.f32 %v481_v59, %v476_v61 }
 0x417   : > { %v483_v0 = vadd.f32 %v482_v63, %v473_v62 }
 0x419   : > { %v484_v1 = vmax.f32 %v483_v0, 0.0 }
 0x41b   : > { %815 = vmatmul.mubr.msk.f32.vlgmr.msra.gmra.mrb[2].mxu1 %vm289_vm2, %v484_v1 }
 0x4ee   : > { %v562_v6 = vpop.f32.mrb[2].mxu1 }
 0x4ef   : > { %v563_v7 = vadd.f32 %v746_v5, %v562_v6  ;;  %v816_v8 = vpop.f32.mrb[3].mxu1 }
 0x4f1   : > { %v566_v9 = vmax.f32 %v563_v7, 0.0 }
 0x4f3   : > { %826 = vmatmul.mubr.msk.f32.vlgmr.msra.gmra.mrb[4].mxu0 %vm289_vm2, %v566_v9 }
 0x5c6   : > { %v640_v11 = vpop.f32.mrb[4].mxu0 }
 0x5c7   : > { %v644_v12 = vadd.f32 %v640_v11, %v993_v31  ;;  %v827_v13 = vpop.f32.mrb[5].mxu0 }
 0x5c9   : > { %v657_v14 = vsel %vm652_vm7, %v644_v12, -inf  ;;  %v654_v15 = vsel %vm649_vm8, %v644_v12, -inf  ;;  %v675_v31 = vsel %vm674_vm10, %v644_v12, 0.0 }
 0x5ca   : > { %658 = vmax.xlane.f32.xlu1 %v657_v14  ;;  %655 = vmax.xlane.f32.xlu0 %v654_v15 }
 0x657   : > { %v659_v16 = vpop.xlane.xlu1 %658  ;;  %v656_v17 = vpop.xlane.xlu0 %655 }
 0x658   : > { %v660_v18 = vsel %vm648_vm6, %v656_v17, %v659_v16 }
 0x659   : > { %v661_v19 = vsub.f32 %v644_v12, %v660_v18 }
 0x65b   : > { %v662_v20 = vsel %vm653_vm9, %v661_v19, -inf }
 0x65c   : > { %v663_v21 = vmul.f32 1.442695, %v662_v20 }
 0x65e   : > { %875 = vpow2.f32 %v663_v21 }
 0x668   : > { %v876_v22 = vpop.eup %875 }
 0x669   : > { %v665_v23 = vsel %vm648_vm6, %v876_v22, 0.0  ;;  %v668_v24 = vsel %vm650_vm3, %v876_v22, 0.0 }
 0x66a   : > { %666 = vadd.xlane.f32.xlu0 %v665_v23 }
 0x66e   : > { %669 = vadd.xlane.f32.xlu0 %v668_v24 }
 0x6f7   : > { %v667_v25 = vpop.xlane.xlu0 %666 }
 0x6f8   : > { %877 = vrcp.f32 %v667_v25 }
 0x6fb   : > { %v670_v26 = vpop.xlane.xlu0 %669 }
 0x6fc   : > { %879 = vrcp.f32 %v670_v26 }
 0x702   : > { %v878_v27 = vpop.eup %877 }
 0x706   : > { %v880_v28 = vpop.eup %879 }
 0x707   : > { %v673_v29 = vsel %vm648_vm6, %v878_v27, %v880_v28 }
 0x708   : > { %v676_v30 = vmul.f32 %v876_v22, %v673_v29 }
 0x70a   : > { %v677_v32 = vadd.f32 %v676_v30, %v675_v31 }
 0x70c   : > { %678 = vst [vmem:[%s192_s29] sm:$0xff] %v677_v32 }
 0x70d PF: > { %s14_s15 = sadd.s32 1, %s887_s15  }
 0x70e   : > { %p11_p4 = scmp.ge.s32.totalorder %s14_s15, 7  }
 0x710   :  { %13 = sbr.rel (!%p11_p4) target bundleno = 1 (0x1), region = 66 }

</bundles_post_ra>
